<compile_context>
chip_gen: v7x
topology: tpu7x:2x2x1
jax: 0.10.0
libtpu: 0.0.40
codegen_flags: <defaults>
</compile_context>

<pallas_src>
import functools

import jax
import jax.numpy as jnp
from jax.experimental import pallas as pl
from jax.experimental.pallas import tpu as pltpu


def _pick_div(n, target):
    """Pick a block size for a (sub)lane-constrained dim: either a multiple of 8 that
    divides n and is <= target, or the full extent n (always legal)."""
    if n <= target:
        return n
    best = 0
    for d in range(8, target + 1, 8):
        if n % d == 0:
            best = d
    return best if best > 0 else n


# ---------------------------------------------------------------------------
# Embedding: scalar-prefetch row gather.  The token id selects the table block
# directly in the index_map, so each grid step is a single (1,1,E) row copy.
# ---------------------------------------------------------------------------
def _embedding_gather_kernel(ids_ref, table_ref, out_ref):
    # The BlockSpec index_map already selected table row ids[i]; just copy it out.
    del ids_ref
    out_ref[...] = table_ref[...]


def embedding_lookup(tokens, table):
    """tokens: (B, T) int32; table: (V, E) f32 -> (B, T, E) f32."""
    B, T = tokens.shape
    V, E = table.shape
    BT = B * T
    ids = tokens.reshape(BT).astype(jnp.int32)
    # Reshape to (V, 1, E) so the block's last-two dims equal the full array dims
    # (gather happens on the leading dim, which has no tiling constraint).
    table3 = table.reshape(V, 1, E)
    out = pl.pallas_call(
        _embedding_gather_kernel,
        out_shape=jax.ShapeDtypeStruct((BT, 1, E), jnp.float32),
        grid_spec=pltpu.PrefetchScalarGridSpec(
            num_scalar_prefetch=1,
            grid=(BT,),
            in_specs=[pl.BlockSpec((1, 1, E), lambda i, ids: (ids[i], 0, 0))],
            out_specs=pl.BlockSpec((1, 1, E), lambda i, ids: (i, 0, 0)),
        ),
        compiler_params=pltpu.CompilerParams(
            dimension_semantics=("arbitrary",)),
        cost_estimate=pl.CostEstimate(
            flops=0, transcendentals=0,
            bytes_accessed=int(2 * BT * E * 4)),
    )(ids, table3)
    return out.reshape(B, T, E)


# ---------------------------------------------------------------------------
# LSTM input projection: one large (BT, E) @ (E, 4H) + bias matmul, tiled over
# rows so the MXU sees big blocks and the pipeline overlaps HBM traffic.
# ---------------------------------------------------------------------------
def _input_proj_kernel(x_ref, wT_ref, b_ref, out_ref):
    out_ref[...] = (
        jnp.dot(x_ref[...], wT_ref[...], preferred_element_type=jnp.float32)
        + b_ref[...])


def input_projection(x, w_ihT, bias, *, block_rows=256):
    """x: (B, T, E); w_ihT: (E, 4H); bias: (1, 4H) -> (B, T, 4H)."""
    B, T, E = x.shape
    G = w_ihT.shape[1]                      # 4H
    BT = B * T
    bm = _pick_div(BT, block_rows)
    x2d = x.reshape(BT, E)
    out = pl.pallas_call(
        _input_proj_kernel,
        out_shape=jax.ShapeDtypeStruct((BT, G), jnp.float32),
        grid=(BT // bm,),
        in_specs=[pl.BlockSpec((bm, E), lambda i: (i, 0)),
                  pl.BlockSpec((E, G), lambda i: (0, 0)),
                  pl.BlockSpec((1, G), lambda i: (0, 0))],
        out_specs=pl.BlockSpec((bm, G), lambda i: (i, 0)),
        compiler_params=pltpu.CompilerParams(
            dimension_semantics=("parallel",),
            vmem_limit_bytes=32 * 1024 * 1024),
        cost_estimate=pl.CostEstimate(
            flops=int(2 * BT * E * G),
            transcendentals=0,
            bytes_accessed=int(4 * (BT * E + E * G + G + BT * G))),
    )(x2d, w_ihT, bias)
    return out.reshape(B, T, G)


# ---------------------------------------------------------------------------
# LSTM recurrence: grid = (batch blocks ["parallel"], time tiles ["arbitrary"]).
# Only the small (B,H) x (H,4H) matmul stays inside the serial time loop; the
# precomputed input gates stream in as pipelined (B, tT, 4H) tiles.  h/c are
# carried across time tiles in VMEM scratch.
# PyTorch gate order [i, f, g, o]; c' = f*c + i*g; h' = o*tanh(c').
# ---------------------------------------------------------------------------
def _lstm_recurrence_kernel(xg_ref, whhT_ref, out_ref, hN_ref, cN_ref,
                            h_sc, c_sc):
    t_blk = pl.program_id(1)

    @pl.when(t_blk == 0)
    def _():
        h_sc[...] = jnp.zeros_like(h_sc)
        c_sc[...] = jnp.zeros_like(c_sc)

    tT = xg_ref.shape[1]
    H = hN_ref.shape[-1]
    w_hh = whhT_ref[...]                     # (H, 4H), hoisted out of the loop

    def step(t, carry):
        h, c = carry
        # Read a single timestep directly from the pipelined tile (no full-seq value live).
        xg_t = xg_ref[:, pl.ds(t, 1), :][:, 0, :]                       # (bB, 4H)
        gates = xg_t + jnp.dot(h, w_hh, preferred_element_type=jnp.float32)
        i = jax.nn.sigmoid(gates[:, 0 * H:1 * H])
        f = jax.nn.sigmoid(gates[:, 1 * H:2 * H])
        g = jnp.tanh(gates[:, 2 * H:3 * H])
        o = jax.nn.sigmoid(gates[:, 3 * H:4 * H])
        c_new = f * c + i * g
        h_new = o * jnp.tanh(c_new)
        # NOTE: for production sizes keep H a multiple of 128 so this store is lane-dense.
        out_ref[:, pl.ds(t, 1), :] = h_new[:, None, :]
        return (h_new, c_new)

    hT, cT = jax.lax.fori_loop(0, tT, step, (h_sc[...], c_sc[...]))
    h_sc[...] = hT
    c_sc[...] = cT
    # hN/cN blocks are revisited across the time axis; the value flushed to HBM is
    # the one written on the final time tile, i.e. the true (h_T, c_T).
    hN_ref[...] = hT
    cN_ref[...] = cT


def lstm_recurrence(xg, w_hhT, *, block_t=128):
    """xg: (B, T, 4H) precomputed input gates (+bias); w_hhT: (H, 4H)."""
    B, T, G = xg.shape
    H = w_hhT.shape[0]
    tT = _pick_div(T, block_t)
    bB = B   # TODO(synk): split batch blocks (multiple of 8) for v7x dual-TC when B is large.
    grid = (B // bB, T // tT)
    out_shapes = (
        jax.ShapeDtypeStruct((B, T, H), jnp.float32),   # per-step hidden outputs
        jax.ShapeDtypeStruct((B, H), jnp.float32),      # h_T
        jax.ShapeDtypeStruct((B, H), jnp.float32),      # c_T
    )
    return pl.pallas_call(
        _lstm_recurrence_kernel,
        out_shape=out_shapes,
        grid=grid,
        in_specs=[pl.BlockSpec((bB, tT, G), lambda b, t: (b, t, 0)),
                  pl.BlockSpec((H, G), lambda b, t: (0, 0))],
        out_specs=(pl.BlockSpec((bB, tT, H), lambda b, t: (b, t, 0)),
                   pl.BlockSpec((bB, H), lambda b, t: (b, 0)),
                   pl.BlockSpec((bB, H), lambda b, t: (b, 0))),
        scratch_shapes=[pltpu.VMEM((bB, H), jnp.float32),
                        pltpu.VMEM((bB, H), jnp.float32)],
        compiler_params=pltpu.CompilerParams(
            dimension_semantics=("parallel", "arbitrary"),
            vmem_limit_bytes=32 * 1024 * 1024),
        cost_estimate=pl.CostEstimate(
            flops=int(2 * B * T * H * G + 10 * B * T * H),
            transcendentals=int(5 * B * T * H),
            bytes_accessed=int(4 * (B * T * G + B * T * H + H * G + 2 * B * H))),
    )(xg, w_hhT)


# ---------------------------------------------------------------------------
# Encoder: embedding -> (dropout = identity in eval) -> num_layers LSTM stack.
# ---------------------------------------------------------------------------
def init_encoder_params(key, input_size, embedding_size, hidden_size, num_layers):
    params = {}
    k_emb, key = jax.random.split(key)
    # nn.Embedding default init: N(0, 1)
    params["embedding"] = jax.random.normal(
        k_emb, (input_size, embedding_size), jnp.float32)
    bound = 1.0 / float(hidden_size) ** 0.5
    for layer in range(num_layers):
        in_dim = embedding_size if layer == 0 else hidden_size
        k1, k2, k3, k4, key = jax.random.split(key, 5)
        # nn.LSTM default init: U(-1/sqrt(H), 1/sqrt(H))
        w_ih = jax.random.uniform(k1, (4 * hidden_size, in_dim), jnp.float32, -bound, bound)
        w_hh = jax.random.uniform(k2, (4 * hidden_size, hidden_size), jnp.float32, -bound, bound)
        b_ih = jax.random.uniform(k3, (4 * hidden_size,), jnp.float32, -bound, bound)
        b_hh = jax.random.uniform(k4, (4 * hidden_size,), jnp.float32, -bound, bound)
        # Store pre-transposed weights and the pre-combined bias once, at init time.
        params[f"w_ihT_{layer}"] = jnp.transpose(w_ih)                    # (in_dim, 4H)
        params[f"w_hhT_{layer}"] = jnp.transpose(w_hh)                    # (H, 4H)
        params[f"bias_{layer}"] = (b_ih + b_hh).reshape(1, 4 * hidden_size)
    return params


@functools.partial(jax.jit, static_argnames=("num_layers",))
def encoder_forward(params, tokens, *, num_layers):
    embedded = embedding_lookup(tokens, params["embedding"])     # (B, T, E)
    # dropout: identity in eval mode.
    layer_in = embedded
    h_list, c_list = [], []
    outputs = None
    for layer in range(num_layers):
        xg = input_projection(layer_in,
                              params[f"w_ihT_{layer}"],
                              params[f"bias_{layer}"])           # (B, T, 4H)
        outputs, h_n, c_n = lstm_recurrence(xg, params[f"w_hhT_{layer}"])
        layer_in = outputs
        h_list.append(h_n)
        c_list.append(c_n)
    hidden = jnp.stack(h_list, axis=0)   # (num_layers, B, H)
    cell = jnp.stack(c_list, axis=0)     # (num_layers, B, H)
    return outputs, (hidden, cell)


if __name__ == "__main__":
    # Small, module-consistent shapes.
    INPUT_SIZE = 50       # vocab
    EMBEDDING_SIZE = 32
    HIDDEN_SIZE = 32
    NUM_LAYERS = 2
    B, T = 2, 8

    root = jax.random.PRNGKey(0)
    k_tok, k_par = jax.random.split(root)
    tokens = jax.random.randint(k_tok, (B, T), 0, INPUT_SIZE, dtype=jnp.int32)
    params = init_encoder_params(k_par, INPUT_SIZE, EMBEDDING_SIZE,
                                 HIDDEN_SIZE, NUM_LAYERS)

    outputs, (hidden, cell) = encoder_forward(params, tokens,
                                              num_layers=NUM_LAYERS)
    jax.block_until_ready((outputs, hidden, cell))

    assert outputs.shape == (B, T, HIDDEN_SIZE)
    assert hidden.shape == (NUM_LAYERS, B, HIDDEN_SIZE)
    assert cell.shape == (NUM_LAYERS, B, HIDDEN_SIZE)
    assert bool(jnp.all(jnp.isfinite(outputs)))
    print("KERNEL_OK")
</pallas_src>

<mosaic_0001>
module attributes {stable_mosaic.version = 11 : i64} {
  func.func @_embedding_gather_kernel(%arg0: i32, %arg1: memref<16xi32, #tpu.memory_space<smem>>, %arg2: memref<1x1x32xf32, #tpu.memory_space<vmem>>, %arg3: memref<1x1x32xf32, #tpu.memory_space<vmem>>) attributes {dimension_semantics = [#tpu.dimension_semantics<arbitrary>], iteration_bounds = array<i64: 16>, scalar_prefetch = 1 : i64, scratch_operands = 0 : i64, tpu.core_type = #tpu.core_type<tc>, window_params = [{transform_indices = @transform_0, window_bounds = array<i64: 1, 1, 32>}, {transform_indices = @transform_1, window_bounds = array<i64: 1, 1, 32>}]} {
    %c0 = arith.constant 0 : index
    %c0_0 = arith.constant 0 : index
    %c0_1 = arith.constant 0 : index
    %0 = vector.load %arg2[%c0, %c0_0, %c0_1] : memref<1x1x32xf32, #tpu.memory_space<vmem>>, vector<1x1x32xf32>
    %c0_2 = arith.constant 0 : index
    %c0_3 = arith.constant 0 : index
    %c0_4 = arith.constant 0 : index
    %1 = vector.load %arg3[%c0_2, %c0_3, %c0_4] : memref<1x1x32xf32, #tpu.memory_space<vmem>>, vector<1x1x32xf32>
    tpu.vector_store %arg3[%c0_2, %c0_3, %c0_4], %0 {strides = array<i32>} : memref<1x1x32xf32, #tpu.memory_space<vmem>>, vector<1x1x32xf32>,
    return
  }
  func.func @transform_0(%arg0: i32, %arg1: memref<16xi32, #tpu.memory_space<smem>>) -> (i32, i32, i32) {
    %0 = arith.index_cast %arg0 : i32 to index
    %1 = memref.load %arg1[%0] : memref<16xi32, #tpu.memory_space<smem>>
    %c0_i32 = arith.constant 0 : i32
    %c0_i32_0 = arith.constant 0 : i32
    %c0_i32_1 = arith.constant 0 : i32
    return %1, %c0_i32, %c0_i32_0 : i32, i32, i32
  }
  func.func @transform_1(%arg0: i32, %arg1: memref<16xi32, #tpu.memory_space<smem>>) -> (i32, i32, i32) {
    %c0_i32 = arith.constant 0 : i32
    %c0_i32_0 = arith.constant 0 : i32
    %c0_i32_1 = arith.constant 0 : i32
    return %arg0, %c0_i32, %c0_i32_0 : i32, i32, i32
  }
}

module attributes {stable_mosaic.version = 11 : i64} {
  func.func @_input_proj_kernel(%arg0: i32, %arg1: memref<16x32xf32, #tpu.memory_space<vmem>>, %arg2: memref<32x128xf32, #tpu.memory_space<vmem>>, %arg3: memref<1x128xf32, #tpu.memory_space<vmem>>, %arg4: memref<16x128xf32, #tpu.memory_space<vmem>>) attributes {dimension_semantics = [#tpu.dimension_semantics<parallel>], iteration_bounds = array<i64: 1>, scalar_prefetch = 0 : i64, scratch_operands = 0 : i64, tpu.core_type = #tpu.core_type<tc>, window_params = [{transform_indices = @transform_0, window_bounds = array<i64: 16, 32>}, {pipeline_mode = #tpu.pipeline_mode<synchronous>, transform_indices = @transform_1, window_bounds = array<i64: 32, 128>}, {pipeline_mode = #tpu.pipeline_mode<synchronous>, transform_indices = @transform_2, window_bounds = array<i64: 1, 128>}, {transform_indices = @transform_3, window_bounds = array<i64: 16, 128>}]} {
    %c0 = arith.constant 0 : index
    %c0_0 = arith.constant 0 : index
    %0 = vector.load %arg1[%c0, %c0_0] : memref<16x32xf32, #tpu.memory_space<vmem>>, vector<16x32xf32>
    %c0_1 = arith.constant 0 : index
    %c0_2 = arith.constant 0 : index
    %1 = vector.load %arg2[%c0_1, %c0_2] : memref<32x128xf32, #tpu.memory_space<vmem>>, vector<32x128xf32>
    %cst = arith.constant dense<0.000000e+00> : vector<16x128xf32>
    %2 = tpu.matmul %0, %1, %cst {dimension_numbers = #tpu.dot_dimension_numbers<[1], [0], [0], [1], [0, 0, 1, 1], [], []>} : vector<16x32xf32>, vector<32x128xf32>, vector<16x128xf32> -> vector<16x128xf32>
    %c0_3 = arith.constant 0 : index
    %c0_4 = arith.constant 0 : index
    %3 = vector.load %arg3[%c0_3, %c0_4] : memref<1x128xf32, #tpu.memory_space<vmem>>, vector<1x128xf32>
    %4 = vector.broadcast %3 : vector<1x128xf32> to vector<16x128xf32>
    %5 = arith.addf %2, %4 : vector<16x128xf32>
    %c0_5 = arith.constant 0 : index
    %c0_6 = arith.constant 0 : index
    %6 = vector.load %arg4[%c0_5, %c0_6] : memref<16x128xf32, #tpu.memory_space<vmem>>, vector<16x128xf32>
    tpu.vector_store %arg4[%c0_5, %c0_6], %5 {strides = array<i32>} : memref<16x128xf32, #tpu.memory_space<vmem>>, vector<16x128xf32>,
    return
  }
  func.func @transform_0(%arg0: i32) -> (i32, i32) {
    %c0_i32 = arith.constant 0 : i32
    %c0_i32_0 = arith.constant 0 : i32
    return %arg0, %c0_i32 : i32, i32
  }
  func.func @transform_1(%arg0: i32) -> (i32, i32) {
    %c0_i32 = arith.constant 0 : i32
    %c0_i32_0 = arith.constant 0 : i32
    %c0_i32_1 = arith.constant 0 : i32
    return %c0_i32, %c0_i32_0 : i32, i32
  }
  func.func @transform_2(%arg0: i32) -> (i32, i32) {
    %c0_i32 = arith.constant 0 : i32
    %c0_i32_0 = arith.constant 0 : i32
    %c0_i32_1 = arith.constant 0 : i32
    return %c0_i32, %c0_i32_0 : i32, i32
  }
  func.func @transform_3(%arg0: i32) -> (i32, i32) {
    %c0_i32 = arith.constant 0 : i32
    %c0_i32_0 = arith.constant 0 : i32
    return %arg0, %c0_i32 : i32, i32
  }
}

module attributes {stable_mosaic.version = 11 : i64} {
  func.func @_lstm_recurrence_kernel(%arg0: i32, %arg1: i32, %arg2: memref<2x8x128xf32, #tpu.memory_space<vmem>>, %arg3: memref<32x128xf32, #tpu.memory_space<vmem>>, %arg4: memref<2x8x32xf32, #tpu.memory_space<vmem>>, %arg5: memref<2x32xf32, #tpu.memory_space<vmem>>, %arg6: memref<2x32xf32, #tpu.memory_space<vmem>>, %arg7: memref<2x32xf32, #tpu.memory_space<vmem>>, %arg8: memref<2x32xf32, #tpu.memory_space<vmem>>) attributes {dimension_semantics = [#tpu.dimension_semantics<parallel>, #tpu.dimension_semantics<arbitrary>], iteration_bounds = array<i64: 1, 1>, scalar_prefetch = 0 : i64, scratch_operands = 2 : i64, tpu.core_type = #tpu.core_type<tc>, window_params = [{transform_indices = @transform_0, window_bounds = array<i64: 2, 8, 128>}, {pipeline_mode = #tpu.pipeline_mode<synchronous>, transform_indices = @transform_1, window_bounds = array<i64: 32, 128>}, {transform_indices = @transform_2, window_bounds = array<i64: 2, 8, 32>}, {transform_indices = @transform_3, window_bounds = array<i64: 2, 32>}, {transform_indices = @transform_4, window_bounds = array<i64: 2, 32>}]} {
    %c0_i32 = arith.constant 0 : i32
    %0 = arith.cmpi eq, %arg1, %c0_i32 : i32
    %1 = arith.extui %0 : i1 to i32
    %c0_i32_0 = arith.constant 0 : i32
    %2 = arith.cmpi ne, %1, %c0_i32_0 : i32
    scf.if %2 {
      %cst = arith.constant 0.000000e+00 : f32
      %12 = vector.broadcast %cst : f32 to vector<2x32xf32>
      %c0_16 = arith.constant 0 : index
      %c0_17 = arith.constant 0 : index
      %13 = vector.load %arg7[%c0_16, %c0_17] : memref<2x32xf32, #tpu.memory_space<vmem>>, vector<2x32xf32>
      tpu.vector_store %arg7[%c0_16, %c0_17], %12 {strides = array<i32>} : memref<2x32xf32, #tpu.memory_space<vmem>>, vector<2x32xf32>,
      %cst_18 = arith.constant 0.000000e+00 : f32
      %14 = vector.broadcast %cst_18 : f32 to vector<2x32xf32>
      %c0_19 = arith.constant 0 : index
      %c0_20 = arith.constant 0 : index
      %15 = vector.load %arg8[%c0_19, %c0_20] : memref<2x32xf32, #tpu.memory_space<vmem>>, vector<2x32xf32>
      tpu.vector_store %arg8[%c0_19, %c0_20], %14 {strides = array<i32>} : memref<2x32xf32, #tpu.memory_space<vmem>>, vector<2x32xf32>,
    } else {
    }
    %c0 = arith.constant 0 : index
    %c0_1 = arith.constant 0 : index
    %3 = vector.load %arg3[%c0, %c0_1] : memref<32x128xf32, #tpu.memory_space<vmem>>, vector<32x128xf32>
    %c0_2 = arith.constant 0 : index
    %c0_3 = arith.constant 0 : index
    %4 = vector.load %arg7[%c0_2, %c0_3] : memref<2x32xf32, #tpu.memory_space<vmem>>, vector<2x32xf32>
    %c0_4 = arith.constant 0 : index
    %c0_5 = arith.constant 0 : index
    %5 = vector.load %arg8[%c0_4, %c0_5] : memref<2x32xf32, #tpu.memory_space<vmem>>, vector<2x32xf32>
    %c0_i32_6 = arith.constant 0 : i32
    %c8_i32 = arith.constant 8 : i32
    %6 = arith.addi %c0_i32_6, %c8_i32 : i32
    %c1_i32 = arith.constant 1 : i32
    %7:2 = scf.for %arg9 = %c0_i32_6 to %6 step %c1_i32 iter_args(%arg10 = %4, %arg11 = %5) -> (vector<2x32xf32>, vector<2x32xf32>)  : i32 {
      %c0_16 = arith.constant 0 : index
      %12 = arith.index_cast %arg9 : i32 to index
      %c0_17 = arith.constant 0 : index
      %13 = vector.load %arg2[%c0_16, %12, %c0_17] : memref<2x8x128xf32, #tpu.memory_space<vmem>>, vector<2x1x128xf32>
      %14 = vector.shape_cast %13 : vector<2x1x128xf32> to vector<2x128xf32>
      %cst = arith.constant dense<0.000000e+00> : vector<2x128xf32>
      %15 = tpu.matmul %arg10, %3, %cst {dimension_numbers = #tpu.dot_dimension_numbers<[1], [0], [0], [1], [0, 0, 1, 1], [], []>} : vector<2x32xf32>, vector<32x128xf32>, vector<2x128xf32> -> vector<2x128xf32>
      %16 = arith.addf %14, %15 : vector<2x128xf32>
      %17 = vector.extract_strided_slice %16 {offsets = [0, 0], sizes = [2, 32], strides = [1, 1]} : vector<2x128xf32> to vector<2x32xf32>
      %18 = arith.negf %17 : vector<2x32xf32>
      %19 = math.exp %18 : vector<2x32xf32>
      %cst_18 = arith.constant 1.000000e+00 : f32
      %20 = vector.broadcast %cst_18 : f32 to vector<2x32xf32>
      %21 = arith.addf %20, %19 : vector<2x32xf32>
      %22 = arith.divf %20, %21 : vector<2x32xf32>
      %23 = vector.extract_strided_slice %16 {offsets = [0, 32], sizes = [2, 32], strides = [1, 1]} : vector<2x128xf32> to vector<2x32xf32>
      %24 = arith.negf %23 : vector<2x32xf32>
      %25 = math.exp %24 : vector<2x32xf32>
      %cst_19 = arith.constant 1.000000e+00 : f32
      %26 = vector.broadcast %cst_19 : f32 to vector<2x32xf32>
      %27 = arith.addf %26, %25 : vector<2x32xf32>
      %28 = arith.divf %26, %27 : vector<2x32xf32>
      %29 = vector.extract_strided_slice %16 {offsets = [0, 64], sizes = [2, 32], strides = [1, 1]} : vector<2x128xf32> to vector<2x32xf32>
      %30 = math.tanh %29 : vector<2x32xf32>
      %31 = vector.extract_strided_slice %16 {offsets = [0, 96], sizes = [2, 32], strides = [1, 1]} : vector<2x128xf32> to vector<2x32xf32>
      %32 = arith.negf %31 : vector<2x32xf32>
      %33 = math.exp %32 : vector<2x32xf32>
      %cst_20 = arith.constant 1.000000e+00 : f32
      %34 = vector.broadcast %cst_20 : f32 to vector<2x32xf32>
      %35 = arith.addf %34, %33 : vector<2x32xf32>
      %36 = arith.divf %34, %35 : vector<2x32xf32>
      %37 = arith.mulf %28, %arg11 : vector<2x32xf32>
      %38 = arith.mulf %22, %30 : vector<2x32xf32>
      %39 = arith.addf %37, %38 : vector<2x32xf32>
      %40 = math.tanh %39 : vector<2x32xf32>
      %41 = arith.mulf %36, %40 : vector<2x32xf32>
      %42 = vector.shape_cast %41 : vector<2x32xf32> to vector<2x1x32xf32>
      %c0_21 = arith.constant 0 : index
      %43 = arith.index_cast %arg9 : i32 to index
      %c0_22 = arith.constant 0 : index
      %44 = vector.load %arg4[%c0_21, %43, %c0_22] : memref<2x8x32xf32, #tpu.memory_space<vmem>>, vector<2x1x32xf32>
      tpu.vector_store %arg4[%c0_21, %43, %c0_22], %42 {strides = array<i32>} : memref<2x8x32xf32, #tpu.memory_space<vmem>>, vector<2x1x32xf32>,
      scf.yield %41, %39 : vector<2x32xf32>, vector<2x32xf32>
    }
    %c8_i32_7 = arith.constant 8 : i32
    %c0_8 = arith.constant 0 : index
    %c0_9 = arith.constant 0 : index
    %8 = vector.load %arg7[%c0_8, %c0_9] : memref<2x32xf32, #tpu.memory_space<vmem>>, vector<2x32xf32>
    tpu.vector_store %arg7[%c0_8, %c0_9], %7#0 {strides = array<i32>} : memref<2x32xf32, #tpu.memory_space<vmem>>, vector<2x32xf32>,
    %c0_10 = arith.constant 0 : index
    %c0_11 = arith.constant 0 : index
    %9 = vector.load %arg8[%c0_10, %c0_11] : memref<2x32xf32, #tpu.memory_space<vmem>>, vector<2x32xf32>
    tpu.vector_store %arg8[%c0_10, %c0_11], %7#1 {strides = array<i32>} : memref<2x32xf32, #tpu.memory_space<vmem>>, vector<2x32xf32>,
    %c0_12 = arith.constant 0 : index
    %c0_13 = arith.constant 0 : index
    %10 = vector.load %arg5[%c0_12, %c0_13] : memref<2x32xf32, #tpu.memory_space<vmem>>, vector<2x32xf32>
    tpu.vector_store %arg5[%c0_12, %c0_13], %7#0 {strides = array<i32>} : memref<2x32xf32, #tpu.memory_space<vmem>>, vector<2x32xf32>,
    %c0_14 = arith.constant 0 : index
    %c0_15 = arith.constant 0 : index
    %11 = vector.load %arg6[%c0_14, %c0_15] : memref<2x32xf32, #tpu.memory_space<vmem>>, vector<2x32xf32>
    tpu.vector_store %arg6[%c0_14, %c0_15], %7#1 {strides = array<i32>} : memref<2x32xf32, #tpu.memory_space<vmem>>, vector<2x32xf32>,
    return
  }
  func.func @transform_0(%arg0: i32, %arg1: i32) -> (i32, i32, i32) {
    %c0_i32 = arith.constant 0 : i32
    %c0_i32_0 = arith.constant 0 : i32
    return %arg0, %arg1, %c0_i32 : i32, i32, i32
  }
  func.func @transform_1(%arg0: i32, %arg1: i32) -> (i32, i32) {
    %c0_i32 = arith.constant 0 : i32
    %c0_i32_0 = arith.constant 0 : i32
    %c0_i32_1 = arith.constant 0 : i32
    return %c0_i32, %c0_i32_0 : i32, i32
  }
  func.func @transform_2(%arg0: i32, %arg1: i32) -> (i32, i32, i32) {
    %c0_i32 = arith.constant 0 : i32
    %c0_i32_0 = arith.constant 0 : i32
    return %arg0, %arg1, %c0_i32 : i32, i32, i32
  }
  func.func @transform_3(%arg0: i32, %arg1: i32) -> (i32, i32) {
    %c0_i32 = arith.constant 0 : i32
    %c0_i32_0 = arith.constant 0 : i32
    return %arg0, %c0_i32 : i32, i32
  }
  func.func @transform_4(%arg0: i32, %arg1: i32) -> (i32, i32) {
    %c0_i32 = arith.constant 0 : i32
    %c0_i32_0 = arith.constant 0 : i32
    return %arg0, %c0_i32 : i32, i32
  }
}

module attributes {stable_mosaic.version = 11 : i64} {
  func.func @_lstm_recurrence_kernel(%arg0: i32, %arg1: i32, %arg2: memref<2x8x128xf32, #tpu.memory_space<vmem>>, %arg3: memref<32x128xf32, #tpu.memory_space<vmem>>, %arg4: memref<2x8x32xf32, #tpu.memory_space<vmem>>, %arg5: memref<2x32xf32, #tpu.memory_space<vmem>>, %arg6: memref<2x32xf32, #tpu.memory_space<vmem>>, %arg7: memref<2x32xf32, #tpu.memory_space<vmem>>, %arg8: memref<2x32xf32, #tpu.memory_space<vmem>>) attributes {dimension_semantics = [#tpu.dimension_semantics<parallel>, #tpu.dimension_semantics<arbitrary>], iteration_bounds = array<i64: 1, 1>, scalar_prefetch = 0 : i64, scratch_operands = 2 : i64, tpu.core_type = #tpu.core_type<tc>, window_params = [{transform_indices = @transform_0, window_bounds = array<i64: 2, 8, 128>}, {pipeline_mode = #tpu.pipeline_mode<synchronous>, transform_indices = @transform_1, window_bounds = array<i64: 32, 128>}, {transform_indices = @transform_2, window_bounds = array<i64: 2, 8, 32>}, {transform_indices = @transform_3, window_bounds = array<i64: 2, 32>}, {transform_indices = @transform_4, window_bounds = array<i64: 2, 32>}]} {
    %c0_i32 = arith.constant 0 : i32
    %0 = arith.cmpi eq, %arg1, %c0_i32 : i32
    %1 = arith.extui %0 : i1 to i32
    %c0_i32_0 = arith.constant 0 : i32
    %2 = arith.cmpi ne, %1, %c0_i32_0 : i32
    scf.if %2 {
      %cst = arith.constant 0.000000e+00 : f32
      %12 = vector.broadcast %cst : f32 to vector<2x32xf32>
      %c0_16 = arith.constant 0 : index
      %c0_17 = arith.constant 0 : index
      %13 = vector.load %arg7[%c0_16, %c0_17] : memref<2x32xf32, #tpu.memory_space<vmem>>, vector<2x32xf32>
      tpu.vector_store %arg7[%c0_16, %c0_17], %12 {strides = array<i32>} : memref<2x32xf32, #tpu.memory_space<vmem>>, vector<2x32xf32>,
      %cst_18 = arith.constant 0.000000e+00 : f32
      %14 = vector.broadcast %cst_18 : f32 to vector<2x32xf32>
      %c0_19 = arith.constant 0 : index
      %c0_20 = arith.constant 0 : index
      %15 = vector.load %arg8[%c0_19, %c0_20] : memref<2x32xf32, #tpu.memory_space<vmem>>, vector<2x32xf32>
      tpu.vector_store %arg8[%c0_19, %c0_20], %14 {strides = array<i32>} : memref<2x32xf32, #tpu.memory_space<vmem>>, vector<2x32xf32>,
    } else {
    }
    %c0 = arith.constant 0 : index
    %c0_1 = arith.constant 0 : index
    %3 = vector.load %arg3[%c0, %c0_1] : memref<32x128xf32, #tpu.memory_space<vmem>>, vector<32x128xf32>
    %c0_2 = arith.constant 0 : index
    %c0_3 = arith.constant 0 : index
    %4 = vector.load %arg7[%c0_2, %c0_3] : memref<2x32xf32, #tpu.memory_space<vmem>>, vector<2x32xf32>
    %c0_4 = arith.constant 0 : index
    %c0_5 = arith.constant 0 : index
    %5 = vector.load %arg8[%c0_4, %c0_5] : memref<2x32xf32, #tpu.memory_space<vmem>>, vector<2x32xf32>
    %c0_i32_6 = arith.constant 0 : i32
    %c8_i32 = arith.constant 8 : i32
    %6 = arith.addi %c0_i32_6, %c8_i32 : i32
    %c1_i32 = arith.constant 1 : i32
    %7:2 = scf.for %arg9 = %c0_i32_6 to %6 step %c1_i32 iter_args(%arg10 = %4, %arg11 = %5) -> (vector<2x32xf32>, vector<2x32xf32>)  : i32 {
      %c0_16 = arith.constant 0 : index
      %12 = arith.index_cast %arg9 : i32 to index
      %c0_17 = arith.constant 0 : index
      %13 = vector.load %arg2[%c0_16, %12, %c0_17] : memref<2x8x128xf32, #tpu.memory_space<vmem>>, vector<2x1x128xf32>
      %14 = vector.shape_cast %13 : vector<2x1x128xf32> to vector<2x128xf32>
      %cst = arith.constant dense<0.000000e+00> : vector<2x128xf32>
      %15 = tpu.matmul %arg10, %3, %cst {dimension_numbers = #tpu.dot_dimension_numbers<[1], [0], [0], [1], [0, 0, 1, 1], [], []>} : vector<2x32xf32>, vector<32x128xf32>, vector<2x128xf32> -> vector<2x128xf32>
      %16 = arith.addf %14, %15 : vector<2x128xf32>
      %17 = vector.extract_strided_slice %16 {offsets = [0, 0], sizes = [2, 32], strides = [1, 1]} : vector<2x128xf32> to vector<2x32xf32>
      %18 = arith.negf %17 : vector<2x32xf32>
      %19 = math.exp %18 : vector<2x32xf32>
      %cst_18 = arith.constant 1.000000e+00 : f32
      %20 = vector.broadcast %cst_18 : f32 to vector<2x32xf32>
      %21 = arith.addf %20, %19 : vector<2x32xf32>
      %22 = arith.divf %20, %21 : vector<2x32xf32>
      %23 = vector.extract_strided_slice %16 {offsets = [0, 32], sizes = [2, 32], strides = [1, 1]} : vector<2x128xf32> to vector<2x32xf32>
      %24 = arith.negf %23 : vector<2x32xf32>
      %25 = math.exp %24 : vector<2x32xf32>
      %cst_19 = arith.constant 1.000000e+00 : f32
      %26 = vector.broadcast %cst_19 : f32 to vector<2x32xf32>
      %27 = arith.addf %26, %25 : vector<2x32xf32>
      %28 = arith.divf %26, %27 : vector<2x32xf32>
      %29 = vector.extract_strided_slice %16 {offsets = [0, 64], sizes = [2, 32], strides = [1, 1]} : vector<2x128xf32> to vector<2x32xf32>
      %30 = math.tanh %29 : vector<2x32xf32>
      %31 = vector.extract_strided_slice %16 {offsets = [0, 96], sizes = [2, 32], strides = [1, 1]} : vector<2x128xf32> to vector<2x32xf32>
      %32 = arith.negf %31 : vector<2x32xf32>
      %33 = math.exp %32 : vector<2x32xf32>
      %cst_20 = arith.constant 1.000000e+00 : f32
      %34 = vector.broadcast %cst_20 : f32 to vector<2x32xf32>
      %35 = arith.addf %34, %33 : vector<2x32xf32>
      %36 = arith.divf %34, %35 : vector<2x32xf32>
      %37 = arith.mulf %28, %arg11 : vector<2x32xf32>
      %38 = arith.mulf %22, %30 : vector<2x32xf32>
      %39 = arith.addf %37, %38 : vector<2x32xf32>
      %40 = math.tanh %39 : vector<2x32xf32>
      %41 = arith.mulf %36, %40 : vector<2x32xf32>
      %42 = vector.shape_cast %41 : vector<2x32xf32> to vector<2x1x32xf32>
      %c0_21 = arith.constant 0 : index
      %43 = arith.index_cast %arg9 : i32 to index
      %c0_22 = arith.constant 0 : index
      %44 = vector.load %arg4[%c0_21, %43, %c0_22] : memref<2x8x32xf32, #tpu.memory_space<vmem>>, vector<2x1x32xf32>
      tpu.vector_store %arg4[%c0_21, %43, %c0_22], %42 {strides = array<i32>} : memref<2x8x32xf32, #tpu.memory_space<vmem>>, vector<2x1x32xf32>,
      scf.yield %41, %39 : vector<2x32xf32>, vector<2x32xf32>
    }
    %c8_i32_7 = arith.constant 8 : i32
    %c0_8 = arith.constant 0 : index
    %c0_9 = arith.constant 0 : index
    %8 = vector.load %arg7[%c0_8, %c0_9] : memref<2x32xf32, #tpu.memory_space<vmem>>, vector<2x32xf32>
    tpu.vector_store %arg7[%c0_8, %c0_9], %7#0 {strides = array<i32>} : memref<2x32xf32, #tpu.memory_space<vmem>>, vector<2x32xf32>,
    %c0_10 = arith.constant 0 : index
    %c0_11 = arith.constant 0 : index
    %9 = vector.load %arg8[%c0_10, %c0_11] : memref<2x32xf32, #tpu.memory_space<vmem>>, vector<2x32xf32>
    tpu.vector_store %arg8[%c0_10, %c0_11], %7#1 {strides = array<i32>} : memref<2x32xf32, #tpu.memory_space<vmem>>, vector<2x32xf32>,
    %c0_12 = arith.constant 0 : index
    %c0_13 = arith.constant 0 : index
    %10 = vector.load %arg5[%c0_12, %c0_13] : memref<2x32xf32, #tpu.memory_space<vmem>>, vector<2x32xf32>
    tpu.vector_store %arg5[%c0_12, %c0_13], %7#0 {strides = array<i32>} : memref<2x32xf32, #tpu.memory_space<vmem>>, vector<2x32xf32>,
    %c0_14 = arith.constant 0 : index
    %c0_15 = arith.constant 0 : index
    %11 = vector.load %arg6[%c0_14, %c0_15] : memref<2x32xf32, #tpu.memory_space<vmem>>, vector<2x32xf32>
    tpu.vector_store %arg6[%c0_14, %c0_15], %7#1 {strides = array<i32>} : memref<2x32xf32, #tpu.memory_space<vmem>>, vector<2x32xf32>,
    return
  }
  func.func @transform_0(%arg0: i32, %arg1: i32) -> (i32, i32, i32) {
    %c0_i32 = arith.constant 0 : i32
    %c0_i32_0 = arith.constant 0 : i32
    return %arg0, %arg1, %c0_i32 : i32, i32, i32
  }
  func.func @transform_1(%arg0: i32, %arg1: i32) -> (i32, i32) {
    %c0_i32 = arith.constant 0 : i32
    %c0_i32_0 = arith.constant 0 : i32
    %c0_i32_1 = arith.constant 0 : i32
    return %c0_i32, %c0_i32_0 : i32, i32
  }
  func.func @transform_2(%arg0: i32, %arg1: i32) -> (i32, i32, i32) {
    %c0_i32 = arith.constant 0 : i32
    %c0_i32_0 = arith.constant 0 : i32
    return %arg0, %arg1, %c0_i32 : i32, i32, i32
  }
  func.func @transform_3(%arg0: i32, %arg1: i32) -> (i32, i32) {
    %c0_i32 = arith.constant 0 : i32
    %c0_i32_0 = arith.constant 0 : i32
    return %arg0, %c0_i32 : i32, i32
  }
  func.func @transform_4(%arg0: i32, %arg1: i32) -> (i32, i32) {
    %c0_i32 = arith.constant 0 : i32
    %c0_i32_0 = arith.constant 0 : i32
    return %arg0, %c0_i32 : i32, i32
  }
}

</mosaic_0001>

<bundles_post_ra>
// kernel: encoder_forward.5
= control target key start
LH: loop header
LB: loop body
LE: loop exit
PB: predicated region body
PF: predicated region fallthrough
CT: control target
= control target key end

     0   :  { %s231_s0 = inlined_call_operand.vmem [shape: s32[16], index: 0, kind: input, shape index: {}]   ;;  %s232_s1 = inlined_call_operand.vmem [shape: f32[50,1,32], index: 1, kind: input, shape index: {}]   ;;  %s233_s2 = inlined_call_operand.vmem [shape: f32[16,1,32], index: 2, kind: output, shape index: {}]  }
   0x1   :  { %s7_s11 = sshll.u32 %s231_s0, 4  ;;  %s8_s11 = int_to_ptr.vmem [resolvable:$true] %s7_s11 }
   0x2   :  { %s184_s12 = scalar_lea.vmem %s8_s11, 16  ;;  %p189_p1 = scmp.lt.s32.totalorder %s8_s11, %s8_s11 }
   0x3   :  { %p185_p0 = scmp.ne.s32.totalorder %s8_s11, %s184_s12  ;;  %p190_p2 = scmp.lt.s32.totalorder %s184_s12, %s184_s12 }
   0x5   :  { %p191_p3 = por %p190_p2, %p189_p1 }
   0x7   :  { %p192_p4 = pnand %p191_p3, %p185_p0 }
   0x9   :  { %195 = shalt.err (!%p192_p4)  }
   0xa   :  { %s206_s13 = smov [#allocation3]  }
   0xb   :  { %10 = dma.vmem_to_smem %s8_s11, 16, %s206_s13, [#allocation2] }
   0xc   :  { %200 = dma.done.wait [#allocation2], 16 }
   0xd   :  { %201 = vsyncadd [#allocation2], 4294967280 }
   0xe   :  { %12 = sfence }
   0xf   :  { %s202_s14 = smov 0  }
  0x10 LB: > { %s168_s15 = sadd.s32 4294967295, %s204_s14   ;;  %p172_p5 = scmp.ge.s32.totalorder %s204_s14, 1  ;;  %s204_s14 = sphi %s202_s14, %s18_s14  }
  0x11   : > { %p96_p6 = scmp.lt.s32.totalorder %s204_s14, 17 }
  0x13   : > { %p97_p7 = pnand %p172_p5, %p96_p6 }
  0x14   : > { %s113_s0 = sld [smem:[#allocation3 + %s168_s15]] (!%p97_p7)  ;;  %p118_p8 = scmp.lt.s32.totalorder (!%p97_p7), %s168_s15, 15  ;;  %vm122_vm0 = vcmask (!%p97_p7), 253952  }
  0x15   : > { %100 = sbr.rel (%p97_p7) target bundleno = 32 (0x20), region = 24 }
  0x1a   : > { %p114_p9 = scmp.lt.s32.totalorder (!%p97_p7), %s113_s0, 49 }
  0x1c   : > { %s235_s15 = smov (!%p118_p8, %s168_s15), 15  ;;  %s237_s0 = smov (!%p114_p9, %s113_s0), 49 }
  0x1d   : > { %s120_s18 = scalar_lea.vmem %s233_s2, %s235_s15  ;;  %s116_s21 = scalar_lea.vmem %s232_s1, %s237_s0 }
  0x1e   : > { %v121_v0 = vld [vmem:[%s116_s21] sm:$0x1] }
  0x1f   : > { %123 = vst.msk [vmem:[%s120_s18] sm:$0x1] %vm122_vm0, %v121_v0 }
  0x20 PF: > { %s18_s14 = sadd.s32 1, %s204_s14  }
  0x21   : > { %p15_p10 = scmp.ge.s32.totalorder %s18_s14, 18  }
  0x23   :  { %17 = sbr.rel (!%p15_p10) target bundleno = 16 (0x10), region = 54 }

// kernel: encoder_forward.6
= control target key start
LH: loop header
LB: loop body
LE: loop exit
PB: predicated region body
PF: predicated region fallthrough
CT: control target
= control target key end

     0   :  { %vm27_vm0 = vcmask 261120   ;;  %s190_s1 = inlined_call_operand.vmem [shape: f32[32,128], index: 1, kind: input, shape index: {}]   ;;  %s191_s0 = inlined_call_operand.vmem [shape: f32[16,32], index: 0, kind: input, shape index: {}]   ;;  %s192_s2 = inlined_call_operand.vmem [shape: f32[1,128], index: 2, kind: input, shape index: {}]   ;;  %s193_s3 = inlined_call_operand.vmem [shape: f32[16,128], index: 3, kind: output, shape index: {}]  }
   0x1   :  { %v16_v0 = vld [vmem:[%s190_s1] sm:$0xff]  ;;  %v17_v1 = vld [vmem:[%s190_s1 + $0x8] sm:$0xff]  ;;  %v18_v2 = vld [vmem:[%s190_s1 + $0x10] sm:$0xff] }
   0x2   :  { %v135_v3 = vpack.c.bf16 %v17_v1, %v16_v0  ;;  %v19_v4 = vld [vmem:[%s190_s1 + $0x18] sm:$0xff]  ;;  %v14_v5 = vld [vmem:[%s191_s0] sm:$0xff]  ;;  %v15_v7 = vld [vmem:[%s191_s0 + $0x8] sm:$0xff] }
   0x3   :  { %v139_v6 = vpack.c.bf16 %v19_v4, %v18_v2  ;;  %132 = vmatprep.mubr.msk.f32.mxu0 %vm27_vm0, %v14_v5  ;;  %v115_v8 = vld [vmem:[%s192_s2] ss:$0 sm:$0xff] }
   0x4   :  { %136 = vmatprep.subr.bf16.mxu0 %v135_v3 }
   0x5   :  { %138 = vmatpush3.bf16.msra.mxu0 %v135_v3 }
   0x6   :  { %140 = vmatprep.subr.bf16.mxu0 %v139_v6 }
   0x9   :  { %142 = vmatpush3.bf16.msra.mxu0 %v139_v6 }
   0xc   :  { %133 = vmatmul.mubr.msk.f32.vlgmr.msra.gmra.mrb[0].mxu0 %vm27_vm0, %v15_v7 }
  0xdf   :  { %v134_v9 = vpop.f32.mrb[0].mxu0 }
  0xe0   :  { %v106_v10 = vadd.f32 %v134_v9, %v115_v8  ;;  %v100_v11 = vpop.f32.mrb[1].mxu0 }
  0xe1   :  { %v101_v12 = vadd.f32 %v115_v8, %v100_v11 }
  0xe2   :  { %110 = vst [vmem:[%s193_s3 + $0x8] sm:$0xff] %v106_v10 }
  0xe3   :  { %109 = vst [vmem:[%s193_s3] sm:$0xff] %v101_v12 }

// kernel: encoder_forward.9
= control target key start
LH: loop header
LB: loop body
LE: loop exit
PB: predicated region body
PF: predicated region fallthrough
CT: control target
= control target key end

     0   :  { %10 = vsyncpa [#allocation5], 0  ;;  %vm19_vm0 = vcmask 254976   ;;  %v365_v2 = vmov 0.0   ;;  %s426_s23 = smov 0   ;;  %s484_s0 = inlined_call_operand.vmem [shape: f32[2,8,128], index: 0, kind: input, shape index: {}]   ;;  %s485_s1 = inlined_call_operand.vmem [shape: f32[32,128], index: 1, kind: input, shape index: {}]   ;;  %s486_s2 = inlined_call_operand.hbm [shape: f32[2,8,32], index: 2, kind: output, shape index: {0}]   ;;  %s487_s3 = inlined_call_operand.vmem [shape: f32[2,32], index: 3, kind: output, shape index: {1}]   ;;  %s488_s4 = inlined_call_operand.vmem [shape: f32[2,32], index: 4, kind: output, shape index: {2}]  }
   0x1   :  { %v403_v0 = vld [vmem:[%s485_s1] sm:$0xff]  ;;  %v408_v1 = vld [vmem:[%s485_s1 + $0x8] sm:$0xff]  ;;  %20 = vst.msk [vmem:[#allocation2] sm:$0x3] %vm19_vm0, %v365_v2  ;;  %21 = vst.msk [vmem:[#allocation3] sm:$0x3] %vm19_vm0, %v365_v2 }
   0x2   :  { %v415_v3 = vld [vmem:[%s485_s1 + $0x10] sm:$0xff]  ;;  %v420_v4 = vld [vmem:[%s485_s1 + $0x18] sm:$0xff] }
   0x8   :  { %v26_v5 = vld [vmem:[#allocation2] sm:$0x3]   ;;  %v27_v6 = vld [vmem:[#allocation3] sm:$0x3]  }
   0x9 LB: > { %v262_v7 = vpack.c.bf16 %v408_v1, %v403_v0  ;;  %v366_v8 = vmov 0.0|0.0   ;;  %v265_v9 = vpack.c.bf16 %v420_v4, %v415_v3  ;;  %vm367_vm1 = vmmov 0   ;;  %s369_s1 = smov 32   ;;  %s36_s26 = scalar_lea.vmem %s484_s0, %s363_s23  ;;  %s363_s23 = sphi %s426_s23, %s33_s23   ;;  %v359_v5 = vphi %v26_v5, %v490_v5   ;;  %v355_v6 = vphi %v27_v6, %v489_v6  }
   0xa   : > { %261 = vmatprep.subr.bf16.mxu0 %v366_v8  ;;  %v368_v10 = vmov 0.0   ;;  %v134_v11 = vrot.slane %v355_v6, 1  ;;  %vm39_vm2 = vcmask 261120   ;;  %v38_v12 = vld [vmem:[%s36_s26 + $0x8] sm:$0x1]  ;;  %s370_s27 = smov 64  }
   0xb   : > { %263 = vmatpush3.bf16.msra.mxu0 %v262_v7  ;;  %258 = vmatprep.mubr.msk.f32.mxu0 %vm367_vm1, %v368_v10  ;;  %v37_v16 = vld [vmem:[%s36_s26] sm:$0x1]  ;;  %vm188_vm3 = vcmask 1041409   ;;  %s371_s28 = smov 96   ;;  %vm184_vm4 = vcmask 253952   ;;  %s183_s29 = scalar_lea.vmem [#allocation4], %s363_s23 }
   0xc   : > { %264 = vmatprep.subr.bf16.mxu0 %v366_v8  ;;  %137 = vrot.lane.b32.xlu1 %v134_v11, %s369_s1  ;;  %s33_s23 = sadd.s32 1, %s363_s23  }
   0xd   : > { %p30_p0 = scmp.ge.s32.totalorder %s33_s23, 8  }
   0xe   :  { %s372_s8 = smov (%p30_p0), [#allocation4]  }
   0xf   : > { %266 = vmatpush3.bf16.msra.mxu0 %v265_v9  ;;  %s210_s9 = sshll.u32 (%p30_p0), %s372_s8, 4  ;;  %s211_s9 = int_to_ptr.vmem [resolvable:$true] %s210_s9 }
  0x10   : > { %135 = vrot.lane.b32.xlu1 %v355_v6, %s369_s1  ;;  %s317_s10 = scalar_lea.vmem (%p30_p0), %s211_s9, 256  ;;  %p322_p2 = scmp.lt.s32.totalorder (%p30_p0), %s211_s9, %s211_s9 }
  0x11   :  { %p318_p1 = scmp.ne.s32.totalorder (%p30_p0), %s211_s9, %s317_s10  ;;  %p323_p3 = scmp.lt.s32.totalorder (%p30_p0), %s317_s10, %s317_s10 }
  0x12   : > { %259 = vmatmul.mubr.msk.f32.vlgmr.msra.gmra.mrb[0].mxu0 %vm39_vm2, %v359_v5 }
  0x13   :  { %p324_p4 = por (%p30_p0), %p323_p3, %p322_p2 }
  0x15   :  { %p325_p5 = pnand (%p30_p0), %p324_p4, %p318_p1 }
  0x7e   : > { %v138_v33 = vpop.permute.xlu1 %137 }
  0x82   : > { %v136_v35 = vpop.permute.xlu1 %135 }
  0xe5   : > { %v109_v13 = vpop.f32.mrb[0].mxu0 }
  0xe6   : > { %v114_v14 = vrot.slane %v109_v13, 1  ;;  %v260_v15 = vpop.f32.mrb[1].mxu0  ;;  %v117_v18 = vadd.f32 %v109_v13, %v37_v16 }
  0xe8   : > { %v118_v17 = vadd.f32 %v114_v14, %v38_v12  ;;  %v243_v22 = vmul.f32 -1.442695, %v117_v18 }
  0xea   : > { %301 = vtanh.f32 %v118_v17  ;;  %v244_v21 = vmul.f32 -1.442695, %v118_v17 }
  0xeb   : > { %303 = vtanh.f32 %v117_v18 }
  0xec   : > { %305 = vpow2.f32 %v244_v21 }
  0xed   : > { %307 = vpow2.f32 %v243_v22 }
  0xf4   : > { %v302_v19 = vpop.eup %301 }
  0xf5   : > { %147 = vrot.lane.b32.xlu0 %v302_v19, %s370_s27  ;;  %v304_v20 = vpop.eup %303 }
  0xf6   : > { %v306_v23 = vpop.eup %305 }
  0xf7   : > { %v126_v24 = vadd.f32 1.0, %v306_v23  ;;  %v308_v25 = vpop.eup %307 }
  0xf8   : > { %v125_v26 = vadd.f32 1.0, %v308_v25 }
  0xf9   : > { %145 = vrot.lane.b32.xlu0 %v304_v20, %s370_s27  ;;  %309 = vrcp.f32 %v126_v24 }
  0xfa   : > { %311 = vrcp.f32 %v125_v26 }
 0x103   : > { %v310_v27 = vpop.eup %309 }
 0x104   : > { %v312_v30 = vpop.eup %311  ;;  %v142_v34 = vmul.f32 %v310_v27, %v138_v33 }
 0x105   : > { %v141_v38 = vmul.f32 %v312_v30, %v136_v35 }
 0x167   : > { %v148_v28 = vpop.permute.xlu0 %147 }
 0x168   : > { %v152_v29 = vmul.f32 %v310_v27, %v148_v28 }
 0x16a   : > { %157 = vrot.lane.b32.xlu0 %v152_v29, %s369_s1 }
 0x16b   : > { %v146_v31 = vpop.permute.xlu0 %145 }
 0x16c   : > { %v151_v32 = vmul.f32 %v312_v30, %v146_v31 }
 0x16e   : > { %155 = vrot.lane.b32.xlu1 %v151_v32, %s369_s1 }
 0x1dc   : > { %v158_v36 = vpop.permute.xlu0 %157 }
 0x1dd   : > { %v162_v37 = vadd.f32 %v158_v36, %v142_v34 }
 0x1df   : > { %313 = vtanh.f32 %v162_v37  ;;  %v195_v40 = vrot.slane %v162_v37, 7 }
 0x1e0   : > { %v156_v39 = vpop.permute.xlu1 %155 }
 0x1e1   : > { %v161_v41 = vadd.f32 %v156_v39, %v141_v38 }
 0x1e3   : > { %315 = vtanh.f32 %v161_v41  ;;  %v196_v42 = vsel %vm188_vm3, %v195_v40, %v161_v41 }
 0x1e9   : > { %v314_v43 = vpop.eup %313 }
 0x1ea   : > { %169 = vrot.lane.b32.xlu0 %v314_v43, %s370_s27 }
 0x1ed   : > { %v316_v44 = vpop.eup %315 }
 0x1ee   : > { %167 = vrot.lane.b32.xlu1 %v316_v44, %s370_s27 }
 0x25c   : > { %v170_v45 = vpop.permute.xlu0 %169 }
 0x25d   : > { %v174_v46 = vmul.f32 %v310_v27, %v170_v45 }
 0x25f   : > { %179 = vrot.lane.b32.xlu1 %v174_v46, %s369_s1  ;;  %v187_v49 = vrot.slane %v174_v46, 7 }
 0x260   : > { %v168_v47 = vpop.permute.xlu1 %167 }
 0x261   : > { %v173_v48 = vmul.f32 %v312_v30, %v168_v47 }
 0x263   : > { %197 = vrot.lane.b32.xlu1 %v196_v42, %s371_s28  ;;  %177 = vrot.lane.b32.xlu0 %v173_v48, %s369_s1  ;;  %v189_v50 = vsel %vm188_vm3, %v187_v49, %v173_v48 }
 0x267   : > { %190 = vrot.lane.b32.xlu0 %v189_v50, %s369_s1 }
 0x2d1   : > { %v180_v51 = vpop.permute.xlu1 %179 }
 0x2d2   : > { %186 = vst.msk [vmem:[%s183_s29 + $0x8] sm:$0x1] %vm184_vm4, %v180_v51 }
 0x2d4   :  { %32 = sbr.rel (!%p30_p0) target bundleno = 9 (0x9), region = 57 }
 0x2d5   : > { %v178_v52 = vpop.permute.xlu0 %177  ;;  %v198_v53 = vpop.permute.xlu1 %197  }
 0x2d6   : > { %185 = vst.msk [vmem:[%s183_s29] sm:$0x1] %vm184_vm4, %v178_v52  ;;  %v489_v6 = vmov %v198_v53 }
 0x2d7   :  { %202 = vst.msk [vmem:[#allocation3] sm:$0x3] (%p30_p0), %vm19_vm0, %v198_v53  ;;  %204 = vst.msk [vmem:[%s488_s4] sm:$0x3] (%p30_p0), %vm19_vm0, %v198_v53 }
 0x2d9   : > { %v191_v54 = vpop.permute.xlu0 %190  }
 0x2da   : > { %v490_v5 = vmov %v191_v54  ;;  %201 = vst.msk [vmem:[#allocation2] sm:$0x3] (%p30_p0), %vm19_vm0, %v191_v54  ;;  %203 = vst.msk [vmem:[%s487_s3] sm:$0x3] (%p30_p0), %vm19_vm0, %v191_v54 }
 0x2db   :  { %328 = shalt.err (!%p325_p5)
}
 0x2dc   :  { %s329_s12 = scalar_lea.hbm %s486_s2, 256 }
 0x2dd   :  { %p330_p6 = scmp.ne.s32.totalorder %s486_s2, %s329_s12  ;;  %p333_p7 = scmp.lt.u32.totalorder %s329_s12, %s486_s2 }
 0x2df   :  { %p335_p8 = pnand %p333_p7, %p330_p6 }
 0x2e1   :  { %338 = shalt.err (!%p335_p8)
}
 0x2e2   :  { %s373_s15 = smov 128   ;;  %s374_s16 = smov 8  }
 0x2e3   :  { %216 = dma.vmem_to_hbm [thread:$0]  %s211_s9, 256, %s486_s2, [#allocation5], %s373_s15, %s373_s15, %s374_s16  }
 0x2e4   :  { %351 = dma.done.wait [#allocation5], 256  }
 0x2e5   :  { %352 = vsyncadd [#allocation5], 4294967040 }
 0x2e6   :  { %228 = vsyncpa [#allocation5], 1 }

// kernel: encoder_forward.7
= control target key start
LH: loop header
LB: loop body
LE: loop exit
PB: predicated region body
PF: predicated region fallthrough
CT: control target
= control target key end

     0   :  { %vm18_vm0 = vcmask 254976   ;;  %v325_v0 = vmov 0.0   ;;  %s383_s23 = smov 0   ;;  %s432_s0 = inlined_call_operand.vmem [shape: f32[2,8,128], index: 0, kind: input, shape index: {}]   ;;  %s433_s1 = inlined_call_operand.vmem [shape: f32[32,128], index: 1, kind: input, shape index: {}]   ;;  %s434_s2 = inlined_call_operand.vmem [shape: f32[2,8,32], index: 2, kind: output, shape index: {0}]   ;;  %s435_s3 = inlined_call_operand.vmem [shape: f32[2,32], index: 3, kind: output, shape index: {1}]   ;;  %s436_s4 = inlined_call_operand.vmem [shape: f32[2,32], index: 4, kind: output, shape index: {2}]  }
   0x1   :  { %19 = vst.msk [vmem:[#allocation2] sm:$0x3] %vm18_vm0, %v325_v0  ;;  %20 = vst.msk [vmem:[#allocation3] sm:$0x3] %vm18_vm0, %v325_v0  ;;  %v362_v1 = vld [vmem:[%s433_s1] sm:$0xff]  ;;  %v367_v2 = vld [vmem:[%s433_s1 + $0x8] sm:$0xff] }
   0x2   :  { %v372_v3 = vld [vmem:[%s433_s1 + $0x10] sm:$0xff]  ;;  %v377_v4 = vld [vmem:[%s433_s1 + $0x18] sm:$0xff] }
   0x8   :  { %v25_v5 = vld [vmem:[#allocation2] sm:$0x3]   ;;  %v26_v6 = vld [vmem:[#allocation3] sm:$0x3]  }
   0x9 LB: > { %v249_v7 = vpack.c.bf16 %v367_v2, %v362_v1  ;;  %v326_v8 = vmov 0.0|0.0   ;;  %v252_v9 = vpack.c.bf16 %v377_v4, %v372_v3  ;;  %vm327_vm1 = vmmov 0   ;;  %s329_s1 = smov 32   ;;  %s35_s26 = scalar_lea.vmem %s432_s0, %s323_s23  ;;  %s323_s23 = sphi %s383_s23, %s32_s23   ;;  %v319_v5 = vphi %v25_v5, %v438_v5   ;;  %v315_v6 = vphi %v26_v6, %v437_v6  }
   0xa   : > { %248 = vmatprep.subr.bf16.mxu0 %v326_v8  ;;  %v328_v10 = vmov 0.0   ;;  %v133_v11 = vrot.slane %v315_v6, 1  ;;  %vm38_vm2 = vcmask 261120   ;;  %v37_v12 = vld [vmem:[%s35_s26 + $0x8] sm:$0x1]  ;;  %s330_s27 = smov 64   ;;  %s182_s5 = scalar_lea.vmem %s434_s2, %s323_s23 }
   0xb   : > { %250 = vmatpush3.bf16.msra.mxu0 %v249_v7  ;;  %245 = vmatprep.mubr.msk.f32.mxu0 %vm327_vm1, %v328_v10  ;;  %v36_v16 = vld [vmem:[%s35_s26] sm:$0x1]  ;;  %vm187_vm3 = vcmask 1041409   ;;  %s331_s28 = smov 96   ;;  %vm183_vm4 = vcmask 253952   ;;  %s32_s23 = sadd.s32 1, %s323_s23  }
   0xc   : > { %251 = vmatprep.subr.bf16.mxu0 %v326_v8  ;;  %136 = vrot.lane.b32.xlu1 %v133_v11, %s329_s1  ;;  %p29_p0 = scmp.ge.s32.totalorder %s32_s23, 8  }
   0xf   : > { %253 = vmatpush3.bf16.msra.mxu0 %v252_v9 }
  0x10   : > { %134 = vrot.lane.b32.xlu1 %v315_v6, %s329_s1 }
  0x12   : > { %246 = vmatmul.mubr.msk.f32.vlgmr.msra.gmra.mrb[0].mxu0 %vm38_vm2, %v319_v5 }
  0x7e   : > { %v137_v33 = vpop.permute.xlu1 %136 }
  0x82   : > { %v135_v35 = vpop.permute.xlu1 %134 }
  0xe5   : > { %v108_v13 = vpop.f32.mrb[0].mxu0 }
  0xe6   : > { %v113_v14 = vrot.slane %v108_v13, 1  ;;  %v247_v15 = vpop.f32.mrb[1].mxu0  ;;  %v116_v18 = vadd.f32 %v108_v13, %v36_v16 }
  0xe8   : > { %v117_v17 = vadd.f32 %v113_v14, %v37_v12  ;;  %v230_v22 = vmul.f32 -1.442695, %v116_v18 }
  0xea   : > { %285 = vtanh.f32 %v117_v17  ;;  %v231_v21 = vmul.f32 -1.442695, %v117_v17 }
  0xeb   : > { %287 = vtanh.f32 %v116_v18 }
  0xec   : > { %289 = vpow2.f32 %v231_v21 }
  0xed   : > { %291 = vpow2.f32 %v230_v22 }
  0xf4   : > { %v286_v19 = vpop.eup %285 }
  0xf5   : > { %146 = vrot.lane.b32.xlu0 %v286_v19, %s330_s27  ;;  %v288_v20 = vpop.eup %287 }
  0xf6   : > { %v290_v23 = vpop.eup %289 }
  0xf7   : > { %v125_v24 = vadd.f32 1.0, %v290_v23  ;;  %v292_v25 = vpop.eup %291 }
  0xf8   : > { %v124_v26 = vadd.f32 1.0, %v292_v25 }
  0xf9   : > { %144 = vrot.lane.b32.xlu0 %v288_v20, %s330_s27  ;;  %293 = vrcp.f32 %v125_v24 }
  0xfa   : > { %295 = vrcp.f32 %v124_v26 }
 0x103   : > { %v294_v27 = vpop.eup %293 }
 0x104   : > { %v296_v30 = vpop.eup %295  ;;  %v141_v34 = vmul.f32 %v294_v27, %v137_v33 }
 0x105   : > { %v140_v38 = vmul.f32 %v296_v30, %v135_v35 }
 0x167   : > { %v147_v28 = vpop.permute.xlu0 %146 }
 0x168   : > { %v151_v29 = vmul.f32 %v294_v27, %v147_v28 }
 0x16a   : > { %156 = vrot.lane.b32.xlu0 %v151_v29, %s329_s1 }
 0x16b   : > { %v145_v31 = vpop.permute.xlu0 %144 }
 0x16c   : > { %v150_v32 = vmul.f32 %v296_v30, %v145_v31 }
 0x16e   : > { %154 = vrot.lane.b32.xlu1 %v150_v32, %s329_s1 }
 0x1dc   : > { %v157_v36 = vpop.permute.xlu0 %156 }
 0x1dd   : > { %v161_v37 = vadd.f32 %v157_v36, %v141_v34 }
 0x1df   : > { %297 = vtanh.f32 %v161_v37  ;;  %v194_v40 = vrot.slane %v161_v37, 7 }
 0x1e0   : > { %v155_v39 = vpop.permute.xlu1 %154 }
 0x1e1   : > { %v160_v41 = vadd.f32 %v155_v39, %v140_v38 }
 0x1e3   : > { %299 = vtanh.f32 %v160_v41  ;;  %v195_v42 = vsel %vm187_vm3, %v194_v40, %v160_v41 }
 0x1e9   : > { %v298_v43 = vpop.eup %297 }
 0x1ea   : > { %168 = vrot.lane.b32.xlu0 %v298_v43, %s330_s27 }
 0x1ed   : > { %v300_v44 = vpop.eup %299 }
 0x1ee   : > { %166 = vrot.lane.b32.xlu1 %v300_v44, %s330_s27 }
 0x25c   : > { %v169_v45 = vpop.permute.xlu0 %168 }
 0x25d   : > { %v173_v46 = vmul.f32 %v294_v27, %v169_v45 }
 0x25f   : > { %178 = vrot.lane.b32.xlu1 %v173_v46, %s329_s1  ;;  %v186_v49 = vrot.slane %v173_v46, 7 }
 0x260   : > { %v167_v47 = vpop.permute.xlu1 %166 }
 0x261   : > { %v172_v48 = vmul.f32 %v296_v30, %v167_v47 }
 0x263   : > { %196 = vrot.lane.b32.xlu1 %v195_v42, %s331_s28  ;;  %176 = vrot.lane.b32.xlu0 %v172_v48, %s329_s1  ;;  %v188_v50 = vsel %vm187_vm3, %v186_v49, %v172_v48 }
 0x267   : > { %189 = vrot.lane.b32.xlu0 %v188_v50, %s329_s1 }
 0x2d1   : > { %v179_v51 = vpop.permute.xlu1 %178 }
 0x2d2   : > { %185 = vst.msk [vmem:[%s182_s5 + $0x8] sm:$0x1] %vm183_vm4, %v179_v51 }
 0x2d4   :  { %31 = sbr.rel (!%p29_p0) target bundleno = 9 (0x9), region = 57 }
 0x2d5   : > { %v177_v52 = vpop.permute.xlu0 %176  ;;  %v197_v53 = vpop.permute.xlu1 %196  }
 0x2d6   : > { %184 = vst.msk [vmem:[%s182_s5] sm:$0x1] %vm183_vm4, %v177_v52  ;;  %v437_v6 = vmov %v197_v53 }
 0x2d7   :  { %201 = vst.msk [vmem:[#allocation3] sm:$0x3] (%p29_p0), %vm18_vm0, %v197_v53  ;;  %203 = vst.msk [vmem:[%s436_s4] sm:$0x3] (%p29_p0), %vm18_vm0, %v197_v53 }
 0x2d9   : > { %v190_v54 = vpop.permute.xlu0 %189  }
 0x2da   : > { %v438_v5 = vmov %v190_v54  ;;  %200 = vst.msk [vmem:[#allocation2] sm:$0x3] (%p29_p0), %vm18_vm0, %v190_v54  ;;  %202 = vst.msk [vmem:[%s435_s3] sm:$0x3] (%p29_p0), %vm18_vm0, %v190_v54 }

</bundles_post_ra>
